<compile_context>
chip_gen: v7x
topology: tpu7x:2x2x1
jax: 0.10.0
libtpu: 0.0.40
codegen_flags: <defaults>
</compile_context>

<pallas_src>
import functools

import jax
import jax.numpy as jnp
from jax.experimental import pallas as pl
from jax.experimental.pallas import tpu as pltpu


def _round_up(a, b):
    return (a + b - 1) // b * b


# Keep resident-W + double-buffered tiles comfortably inside every
# generation's budget (v7x: 64 MiB physical per TC, 32 MiB scoped default).
_VMEM_CAP_BYTES = 48 * 1024 * 1024


# -----------------------------------------------------------------------------
# Kernels
# -----------------------------------------------------------------------------
def _pinn_kernel_resident(x_ref, w_ref, bp_ref, o_ref, *, compute_dtype):
    # x_ref : (TM, IN_p)    native dtype (e.g. f32); cast to bf16 in-register
    # w_ref : (IN_p, OUT_p) compute_dtype, same block for every i -> one DMA total
    # bp_ref: (2, OUT_p)    f32; row 0 = bias, row 1 = physics_weights
    # o_ref : (TM, OUT_p)
    x = x_ref[...].astype(compute_dtype)                      # VPU cast, no extra HBM pass
    acc = jnp.dot(x, w_ref[...], preferred_element_type=jnp.float32)
    bp = bp_ref[...]
    bias = bp[0:1, :]                                         # (1, OUT_p)
    gate = jax.nn.sigmoid(bp[1:2, :])                         # EUP transcendental
    o_ref[...] = ((acc + bias) * gate).astype(o_ref.dtype)


def _pinn_kernel_tiled(x_ref, w_ref, bp_ref, o_ref, acc_ref, *, compute_dtype):
    # x_ref  : (TM, TK) native dtype
    # w_ref  : (TK, TN) compute_dtype (W pre-transposed to (IN_p, OUT_p) at init)
    # bp_ref : (2, TN)  f32
    # o_ref  : (TM, TN)
    # acc_ref: (TM, TN) f32, resident across the K grid axis
    k = pl.program_id(2)

    @pl.when(k == 0)
    def _():
        acc_ref[...] = jnp.zeros_like(acc_ref)

    x = x_ref[...].astype(compute_dtype)
    acc_ref[...] += jnp.dot(x, w_ref[...], preferred_element_type=jnp.float32)

    @pl.when(k == pl.num_programs(2) - 1)
    def _():
        bp = bp_ref[...]
        bias = bp[0:1, :]
        gate = jax.nn.sigmoid(bp[1:2, :])
        o_ref[...] = ((acc_ref[...] + bias) * gate).astype(o_ref.dtype)


# -----------------------------------------------------------------------------
# One-time parameter preparation (do this at module init, NOT per forward call)
# -----------------------------------------------------------------------------
def prepare_params(weight, bias, physics_weights, *, compute_dtype=jnp.bfloat16):
    """Pad to (8,128)-friendly shapes, pre-transpose W to (IN_p, OUT_p), cast to
    the compute dtype, and stack bias/physics into one (2, OUT_p) f32 array."""
    OUT, IN = weight.shape
    IN_p = _round_up(IN, 128)
    OUT_p = _round_up(OUT, 128)
    # Pre-transposed once so the kernel uses a standard [M,K]x[K,N] contraction
    # (avoids any per-tile XLU transpose an NT dot might need).
    w_t = jnp.pad(weight, ((0, OUT_p - OUT), (0, IN_p - IN))).T.astype(compute_dtype)
    bp = jnp.stack([
        jnp.pad(bias.astype(jnp.float32), (0, OUT_p - OUT)),
        jnp.pad(physics_weights.astype(jnp.float32), (0, OUT_p - OUT)),
    ])  # (2, OUT_p) f32
    return w_t, bp


# -----------------------------------------------------------------------------
# Forward
# -----------------------------------------------------------------------------
def physics_informed_forward(x, w_t, bp, out_features, *,
                             compute_dtype=jnp.bfloat16, out_dtype=None,
                             use_pallas=None):
    """x: (B, in_features); w_t: (IN_p, OUT_p) from prepare_params;
    bp: (2, OUT_p) bias/physics stack. Returns (B, out_features)."""
    B, IN = x.shape
    IN_p, OUT_p = w_t.shape
    assert IN <= IN_p and out_features <= OUT_p
    out_dtype = jnp.dtype(out_dtype if out_dtype is not None else x.dtype)

    if use_pallas is None:
        # Tiny problems: padding + pallas_call fixed cost dominate; let XLA fuse.
        use_pallas = B * IN_p * OUT_p >= (1 << 20)
    if not use_pallas:
        acc = jnp.dot(x.astype(compute_dtype), w_t[:IN, :out_features],
                      preferred_element_type=jnp.float32)
        out = (acc + bp[0, :out_features]) * jax.nn.sigmoid(bp[1, :out_features])
        return out.astype(out_dtype)

    # ---- batch tiling (multiple of 16 so bf16-packed tiles stay dense) --------
    TM = min(_round_up(B, 16), 512)
    B_p = _round_up(B, TM)

    # Pad x only if needed (zero K-padding contributes 0 to the dot).
    if B_p != B or IN_p != IN:
        x_p = jnp.pad(x, ((0, B_p - B), (0, IN_p - IN)))
    else:
        x_p = x

    x_item = x_p.dtype.itemsize
    w_item = w_t.dtype.itemsize
    o_item = out_dtype.itemsize
    w_bytes = IN_p * OUT_p * w_item

    # Is the whole (bf16) weight small enough to keep resident in VMEM?
    resident_vmem = (2 * TM * IN_p * x_item          # x tile, double-buffered
                     + 2 * w_bytes                   # W (one DMA; 2 bufs allocated)
                     + 2 * 2 * OUT_p * 4             # bias/physics pair
                     + 2 * TM * OUT_p * o_item)      # output tile, double-buffered
    use_resident = resident_vmem <= 32 * 1024 * 1024

    if use_resident:
        grid = (B_p // TM,)
        cost = pl.CostEstimate(
            flops=2 * B_p * IN_p * OUT_p,
            transcendentals=(B_p // TM) * OUT_p,
            bytes_accessed=(x_p.size * x_item + w_t.size * w_item
                            + bp.size * 4 + B_p * OUT_p * o_item),
        )
        out_p = pl.pallas_call(
            functools.partial(_pinn_kernel_resident, compute_dtype=compute_dtype),
            out_shape=jax.ShapeDtypeStruct((B_p, OUT_p), out_dtype),
            grid_spec=pltpu.PrefetchScalarGridSpec(
                num_scalar_prefetch=0,
                grid=grid,
                in_specs=[
                    pl.BlockSpec((TM, IN_p), lambda i: (i, 0)),      # x tile
                    pl.BlockSpec((IN_p, OUT_p), lambda i: (0, 0)),   # W, resident
                    pl.BlockSpec((2, OUT_p), lambda i: (0, 0)),      # bias+physics
                ],
                out_specs=pl.BlockSpec((TM, OUT_p), lambda i: (i, 0)),
            ),
            compiler_params=pltpu.CompilerParams(
                dimension_semantics=("parallel",),   # batch axis shards across TCs
                vmem_limit_bytes=min(max(2 * resident_vmem, 32 * 1024 * 1024),
                                     _VMEM_CAP_BYTES),
            ),
            cost_estimate=cost,
        )(x_p, w_t, bp)
        return out_p[:B, :out_features]

    # ---- large-weight fallback: (i, j, k) tiling with a VMEM accumulator ------
    # 256-wide N / deep K fills the 256x256 MXU on v6e/v7x; v5e (128x128 MXUs)
    # is fed fine by these shapes too (it is DMA-bound here, not MXU-shape-bound).
    TN = 256 if OUT_p % 256 == 0 else 128
    TK = 128
    for cand in (512, 256, 128):
        if IN_p % cand == 0:
            TK = cand
            break
    grid = (B_p // TM, OUT_p // TN, IN_p // TK)

    tiled_vmem = (2 * TM * TK * x_item + 2 * TK * TN * w_item
                  + 2 * 2 * TN * 4 + 2 * TM * TN * o_item + TM * TN * 4)
    cost = pl.CostEstimate(
        flops=2 * B_p * IN_p * OUT_p,
        transcendentals=(B_p // TM) * OUT_p,
        bytes_accessed=(x_p.size * x_item * (OUT_p // TN)
                        + w_t.size * w_item * (B_p // TM)
                        + bp.size * 4 + B_p * OUT_p * o_item),
    )
    out_p = pl.pallas_call(
        functools.partial(_pinn_kernel_tiled, compute_dtype=compute_dtype),
        out_shape=jax.ShapeDtypeStruct((B_p, OUT_p), out_dtype),
        grid_spec=pltpu.PrefetchScalarGridSpec(
            num_scalar_prefetch=0,
            grid=grid,
            in_specs=[
                pl.BlockSpec((TM, TK), lambda i, j, k: (i, k)),   # x tile
                pl.BlockSpec((TK, TN), lambda i, j, k: (k, j)),   # W tile (in, out)
                pl.BlockSpec((2, TN), lambda i, j, k: (0, j)),    # bias+physics
            ],
            out_specs=pl.BlockSpec((TM, TN), lambda i, j, k: (i, j)),
            scratch_shapes=[pltpu.VMEM((TM, TN), jnp.float32)],
        ),
        compiler_params=pltpu.CompilerParams(
            dimension_semantics=("parallel", "parallel", "arbitrary"),
            vmem_limit_bytes=min(max(2 * tiled_vmem, 32 * 1024 * 1024),
                                 _VMEM_CAP_BYTES),
        ),
        cost_estimate=cost,
    )(x_p, w_t, bp)
    return out_p[:B, :out_features]


# Convenience wrapper matching the torch module's signature (params prepped here
# for a self-contained call; in a real model call prepare_params once at init).
def physics_informed_layer(x, weight, bias, physics_weights, **kwargs):
    compute_dtype = kwargs.pop("compute_dtype", jnp.bfloat16)
    w_t, bp = prepare_params(weight, bias, physics_weights, compute_dtype=compute_dtype)
    return physics_informed_forward(x, w_t, bp, weight.shape[0],
                                    compute_dtype=compute_dtype, **kwargs)


if __name__ == "__main__":
    # Small shapes consistent with the module's forward: x is (batch, in_features).
    batch, in_features, out_features = 8, 32, 64

    key = jax.random.PRNGKey(0)
    kx, kw, kb, kp = jax.random.split(key, 4)

    x = jax.random.normal(kx, (batch, in_features), dtype=jnp.float32)

    # Deterministic parameter init (shapes match nn.Linear(in, out) + randn(out)).
    bound = 1.0 / float(in_features) ** 0.5
    weight = jax.random.uniform(kw, (out_features, in_features),
                                minval=-bound, maxval=bound, dtype=jnp.float32)
    bias = jax.random.uniform(kb, (out_features,),
                              minval=-bound, maxval=bound, dtype=jnp.float32)
    physics_weights = jax.random.normal(kp, (out_features,), dtype=jnp.float32)

    # One-time parameter prep (pad + transpose + bf16 cast + bias/physics stack).
    w_t, bp = prepare_params(weight, bias, physics_weights, compute_dtype=jnp.bfloat16)

    # Force the Pallas path so the kernel is exercised even at demo sizes.
    out = physics_informed_forward(x, w_t, bp, out_features, use_pallas=True)
    out = jax.block_until_ready(out)
    assert out.shape == (batch, out_features)

    # Reference matching the kernel's bf16-input / f32-accumulate matmul.
    xb = x.astype(jnp.bfloat16).astype(jnp.float32)
    wb = weight.astype(jnp.bfloat16).astype(jnp.float32)
    ref_bf16 = (xb @ wb.T + bias) * jax.nn.sigmoid(physics_weights)
    assert jnp.allclose(out, ref_bf16, atol=1e-4, rtol=1e-4)

    # Coarse check against the pure-f32 module semantics.
    # TODO(synk): for precision-sensitive PINN training, pass compute_dtype=jnp.float32.
    ref_f32 = (x @ weight.T + bias) * jax.nn.sigmoid(physics_weights)
    assert jnp.allclose(out, ref_f32, atol=5e-2, rtol=5e-2)

    print("KERNEL_OK")
</pallas_src>

<mosaic_0001>
module attributes {stable_mosaic.version = 11 : i64} {
  func.func @_pinn_kernel_resident(%arg0: i32, %arg1: memref<16x128xf32, #tpu.memory_space<vmem>>, %arg2: memref<128x128xbf16, #tpu.memory_space<vmem>>, %arg3: memref<2x128xf32, #tpu.memory_space<vmem>>, %arg4: memref<16x128xf32, #tpu.memory_space<vmem>>) attributes {dimension_semantics = [#tpu.dimension_semantics<parallel>], iteration_bounds = array<i64: 1>, scalar_prefetch = 0 : i64, scratch_operands = 0 : i64, tpu.core_type = #tpu.core_type<tc>, window_params = [{transform_indices = @transform_0, window_bounds = array<i64: 16, 128>}, {pipeline_mode = #tpu.pipeline_mode<synchronous>, transform_indices = @transform_1, window_bounds = array<i64: 128, 128>}, {pipeline_mode = #tpu.pipeline_mode<synchronous>, transform_indices = @transform_2, window_bounds = array<i64: 2, 128>}, {transform_indices = @transform_3, window_bounds = array<i64: 16, 128>}]} {
    %c0 = arith.constant 0 : index
    %c0_0 = arith.constant 0 : index
    %0 = vector.load %arg1[%c0, %c0_0] : memref<16x128xf32, #tpu.memory_space<vmem>>, vector<16x128xf32>
    %1 = arith.truncf %0 : vector<16x128xf32> to vector<16x128xbf16>
    %c0_1 = arith.constant 0 : index
    %c0_2 = arith.constant 0 : index
    %2 = vector.load %arg2[%c0_1, %c0_2] : memref<128x128xbf16, #tpu.memory_space<vmem>>, vector<128x128xbf16>
    %cst = arith.constant dense<0.000000e+00> : vector<16x128xf32>
    %3 = tpu.matmul %1, %2, %cst {dimension_numbers = #tpu.dot_dimension_numbers<[1], [0], [0], [1], [0, 0, 1, 1], [], []>} : vector<16x128xbf16>, vector<128x128xbf16>, vector<16x128xf32> -> vector<16x128xf32>
    %c0_3 = arith.constant 0 : index
    %c0_4 = arith.constant 0 : index
    %4 = vector.load %arg3[%c0_3, %c0_4] : memref<2x128xf32, #tpu.memory_space<vmem>>, vector<2x128xf32>
    %5 = vector.extract_strided_slice %4 {offsets = [0, 0], sizes = [1, 128], strides = [1, 1]} : vector<2x128xf32> to vector<1x128xf32>
    %6 = vector.extract_strided_slice %4 {offsets = [1, 0], sizes = [1, 128], strides = [1, 1]} : vector<2x128xf32> to vector<1x128xf32>
    %7 = arith.negf %6 : vector<1x128xf32>
    %8 = math.exp %7 : vector<1x128xf32>
    %cst_5 = arith.constant 1.000000e+00 : f32
    %9 = vector.broadcast %cst_5 : f32 to vector<1x128xf32>
    %10 = arith.addf %9, %8 : vector<1x128xf32>
    %11 = arith.divf %9, %10 : vector<1x128xf32>
    %12 = vector.broadcast %5 : vector<1x128xf32> to vector<16x128xf32>
    %13 = arith.addf %3, %12 : vector<16x128xf32>
    %14 = vector.broadcast %11 : vector<1x128xf32> to vector<16x128xf32>
    %15 = arith.mulf %13, %14 : vector<16x128xf32>
    %c0_6 = arith.constant 0 : index
    %c0_7 = arith.constant 0 : index
    %16 = vector.load %arg4[%c0_6, %c0_7] : memref<16x128xf32, #tpu.memory_space<vmem>>, vector<16x128xf32>
    tpu.vector_store %arg4[%c0_6, %c0_7], %15 {strides = array<i32>} : memref<16x128xf32, #tpu.memory_space<vmem>>, vector<16x128xf32>,
    return
  }
  func.func @transform_0(%arg0: i32) -> (i32, i32) {
    %c0_i32 = arith.constant 0 : i32
    %c0_i32_0 = arith.constant 0 : i32
    return %arg0, %c0_i32 : i32, i32
  }
  func.func @transform_1(%arg0: i32) -> (i32, i32) {
    %c0_i32 = arith.constant 0 : i32
    %c0_i32_0 = arith.constant 0 : i32
    %c0_i32_1 = arith.constant 0 : i32
    return %c0_i32, %c0_i32_0 : i32, i32
  }
  func.func @transform_2(%arg0: i32) -> (i32, i32) {
    %c0_i32 = arith.constant 0 : i32
    %c0_i32_0 = arith.constant 0 : i32
    %c0_i32_1 = arith.constant 0 : i32
    return %c0_i32, %c0_i32_0 : i32, i32
  }
  func.func @transform_3(%arg0: i32) -> (i32, i32) {
    %c0_i32 = arith.constant 0 : i32
    %c0_i32_0 = arith.constant 0 : i32
    return %arg0, %c0_i32 : i32, i32
  }
}

</mosaic_0001>

<bundles_post_ra>
// kernel: tpu_custom_call.1
= control target key start
LH: loop header
LB: loop body
LE: loop exit
PB: predicated region body
PF: predicated region fallthrough
CT: control target
= control target key end

     0   :  { %8 = vsyncpa [#allocation3], 0  ;;  %s394_s0 = inlined_call_operand.hbm [shape: f32[16,128], index: 0, kind: input, shape index: {}]   ;;  %s395_s1 = inlined_call_operand.hbm [shape: bf16[128,128], index: 1, kind: input, shape index: {}]   ;;  %s396_s2 = inlined_call_operand.vmem [shape: f32[2,128], index: 2, kind: input, shape index: {}]   ;;  %s397_s3 = inlined_call_operand.hbm [shape: f32[16,128], index: 3, kind: output, shape index: {}]  }
   0x1   :  { %9 = vsyncpa [#allocation6], 0 }
   0x2   :  { %10 = vsyncpa [#allocation4], 0  ;;  %s320_s12 = smov [#allocation2]   ;;  %s248_s16 = scalar_lea.hbm %s394_s0, 256 }
   0x3   :  { %s16_s13 = sshll.u32 %s320_s12, 4  ;;  %p249_p0 = scmp.ne.s32.totalorder %s394_s0, %s248_s16  ;;  %s17_s13 = int_to_ptr.vmem [resolvable:$true] %s16_s13 }
   0x4   :  { %p252_p1 = scmp.lt.u32.totalorder %s248_s16, %s394_s0 }
   0x6   :  { %p254_p2 = pnand %p252_p1, %p249_p0 }
   0x8   :  { %257 = shalt.err (!%p254_p2)
}
   0x9   :  { %s258_s21 = scalar_lea.vmem %s17_s13, 256  ;;  %p263_p4 = scmp.lt.s32.totalorder %s17_s13, %s17_s13 }
   0xa   :  { %p259_p3 = scmp.ne.s32.totalorder %s17_s13, %s258_s21  ;;  %p264_p5 = scmp.lt.s32.totalorder %s258_s21, %s258_s21 }
   0xc   :  { %p265_p6 = por %p264_p5, %p263_p4 }
   0xe   :  { %p266_p7 = pnand %p265_p6, %p259_p3 }
  0x10   :  { %269 = shalt.err (!%p266_p7)
}
  0x11   :  { %s321_s22 = smov 128   ;;  %s322_s23 = smov 8  }
  0x12   :  { %22 = dma.hbm_to_vmem [thread:$0]  %s394_s0, 256, %s17_s13, [#allocation3], %s321_s22, %s321_s22, %s322_s23  }
  0x13   :  { %s323_s26 = smov [#allocation5]   ;;  %s270_s30 = scalar_lea.hbm %s395_s1, 1024 }
  0x14   :  { %s28_s27 = sshll.u32 %s323_s26, 4  ;;  %p271_p8 = scmp.ne.s32.totalorder %s395_s1, %s270_s30  ;;  %s29_s27 = int_to_ptr.vmem [resolvable:$true] %s28_s27 }
  0x15   :  { %p274_p9 = scmp.lt.u32.totalorder %s270_s30, %s395_s1 }
  0x17   :  { %p276_p10 = pnand %p274_p9, %p271_p8 }
  0x19   :  { %279 = shalt.err (!%p276_p10)
}
  0x1a   :  { %s280_s8 = scalar_lea.vmem %s29_s27, 1024  ;;  %p285_p12 = scmp.lt.s32.totalorder %s29_s27, %s29_s27 }
  0x1b   :  { %p281_p11 = scmp.ne.s32.totalorder %s29_s27, %s280_s8  ;;  %p286_p13 = scmp.lt.s32.totalorder %s280_s8, %s280_s8 }
  0x1d   :  { %p287_p0 = por %p286_p13, %p285_p12 }
  0x1f   :  { %p288_p1 = pnand %p287_p0, %p281_p11 }
  0x21   :  { %291 = shalt.err (!%p288_p1)
}
  0x22   :  { %s324_s0 = smov 64   ;;  %s325_s9 = smov 4  }
  0x23   :  { %34 = dma.hbm_to_vmem [thread:$0]  %s395_s1, 1024, %s29_s27, [#allocation6], %s324_s0, %s324_s0, %s325_s9  }
  0x24   :  { %314 = dma.done.wait [#allocation3], 256  }
  0x25   :  { %315 = vsyncadd [#allocation3], 4294967040 }
  0x26   :  { %316 = dma.done.wait [#allocation6], 1024  }
  0x27   :  { %317 = vsyncadd [#allocation6], 4294966272  ;;  %v326_v0 = vmov 0.0   ;;  %vm327_vm0 = vmmov 0   ;;  %v236_v1 = vld [vmem:[#allocation5] sm:$0xff]   ;;  %v237_v2 = vld [vmem:[#allocation5 + $0x8] sm:$0xff]   ;;  %v70_v16 = vlaneseq }
  0x28   :  { %207 = vmatprep.subr.bf16.mxu0 %v326_v0  ;;  %223 = vmatprep.mubr.msk.bf16.mxu0 %vm327_vm0, %v326_v0  ;;  %v238_v3 = vld [vmem:[#allocation5 + $0x10] sm:$0xff]   ;;  %v239_v4 = vld [vmem:[#allocation5 + $0x18] sm:$0xff]   ;;  %v240_v5 = vld [vmem:[#allocation5 + $0x20] sm:$0xff]   ;;  %s328_s13 = smov [#allocation7]  }
  0x29   :  { %208 = vmatpush3.bf16.msra.mxu0 %v236_v1  ;;  %v241_v6 = vld [vmem:[#allocation5 + $0x28] sm:$0xff]   ;;  %v242_v7 = vld [vmem:[#allocation5 + $0x30] sm:$0xff]   ;;  %v243_v8 = vld [vmem:[#allocation5 + $0x38] sm:$0xff]   ;;  %v71_v17 = vshrl.u32 %v70_v16, 7  ;;  %s176_s14 = sshll.u32 %s328_s13, 4  ;;  %s177_s14 = int_to_ptr.vmem [resolvable:$true] %s176_s14 }
  0x2a   :  { %209 = vmatprep.subr.bf16.mxu0 %v326_v0  ;;  %v44_v9 = vld [vmem:[#allocation2] sm:$0xff]  ;;  %v45_v10 = vld [vmem:[#allocation2 + $0x8] sm:$0xff]  ;;  %p297_p3 = scmp.lt.s32.totalorder %s177_s14, %s177_s14 }
  0x2b   :  { %v46_v11 = vpack.c.bf16 %v45_v10, %v44_v9  ;;  %v63_v12 = vld [vmem:[%s396_s2] sm:$0x3]  ;;  %v72_v18 = vsub.s32 0, %v71_v17  ;;  %v165_v19 = vsub.s32 1, %v71_v17  ;;  %s292_s2 = scalar_lea.vmem %s177_s14, 256 }
  0x2c   :  { %v189_v13 = vmul.f32 -1.442695, %v63_v12  ;;  %p293_p2 = scmp.ne.s32.totalorder %s177_s14, %s292_s2  ;;  %p298_p4 = scmp.lt.s32.totalorder %s292_s2, %s292_s2 }
  0x2d   :  { %210 = vmatpush3.bf16.msra.mxu0 %v237_v2  ;;  %v73_v21 = vrot.slane %v63_v12, %v72_v18 }
  0x2e   :  { %211 = vmatprep.subr.bf16.mxu0 %v326_v0  ;;  %244 = vpow2.f32 %v189_v13  ;;  %p299_p5 = por %p298_p4, %p297_p3 }
  0x30   :  { %p300_p6 = pnand %p299_p5, %p293_p2 }
  0x31   :  { %212 = vmatpush3.bf16.msra.mxu0 %v238_v3 }
  0x32   :  { %213 = vmatprep.subr.bf16.mxu0 %v326_v0 }
  0x35   :  { %214 = vmatpush3.bf16.msra.mxu0 %v239_v4 }
  0x36   :  { %215 = vmatprep.subr.bf16.mxu0 %v326_v0 }
  0x38   :  { %v245_v14 = vpop.eup %244 }
  0x39   :  { %216 = vmatpush3.bf16.msra.mxu0 %v240_v5  ;;  %v67_v15 = vadd.f32 1.0, %v245_v14 }
  0x3a   :  { %217 = vmatprep.subr.bf16.mxu0 %v326_v0 }
  0x3b   :  { %246 = vrcp.f32 %v67_v15 }
  0x3d   :  { %218 = vmatpush3.bf16.msra.mxu0 %v241_v6 }
  0x3e   :  { %219 = vmatprep.subr.bf16.mxu0 %v326_v0 }
  0x41   :  { %220 = vmatpush3.bf16.msra.mxu0 %v242_v7 }
  0x42   :  { %221 = vmatprep.subr.bf16.mxu0 %v326_v0 }
  0x45   :  { %222 = vmatpush3.bf16.msra.mxu0 %v243_v8  ;;  %v247_v20 = vpop.eup %246 }
  0x46   :  { %v166_v22 = vrot.slane %v247_v20, %v165_v19 }
  0x48   :  { %224 = vmatmul.mubr.bf16.vlgmr.msra.gmra.mrb[0].mxu0 %v46_v11 }
 0x11b   :  { %v156_v23 = vpop.f32.mrb[0].mxu0 }
 0x11c   :  { %v157_v24 = vadd.f32 %v156_v23, %v73_v21  ;;  %v225_v25 = vpop.f32.mrb[1].mxu0 }
 0x11d   :  { %v159_v26 = vpop.f32.mrb[2].mxu0 }
 0x11e   :  { %v167_v27 = vmul.f32 %v166_v22, %v157_v24  ;;  %v160_v28 = vadd.f32 %v159_v26, %v73_v21  ;;  %v226_v29 = vpop.f32.mrb[3].mxu0 }
 0x120   :  { %169 = vst [vmem:[#allocation7] sm:$0xff] %v167_v27  ;;  %v168_v30 = vmul.f32 %v166_v22, %v160_v28 }
 0x122   :  { %170 = vst [vmem:[#allocation7 + $0x8] sm:$0xff] %v168_v30 }
 0x123   :  { %303 = shalt.err (!%p300_p6)
}
 0x124   :  { %s304_s17 = scalar_lea.hbm %s397_s3, 256 }
 0x125   :  { %p305_p7 = scmp.ne.s32.totalorder %s397_s3, %s304_s17  ;;  %p308_p8 = scmp.lt.u32.totalorder %s304_s17, %s397_s3 }
 0x127   :  { %p310_p9 = pnand %p308_p8, %p305_p7 }
 0x129   :  { %313 = shalt.err (!%p310_p9)
}
 0x12a   :  { %182 = dma.vmem_to_hbm [thread:$0]  %s177_s14, 256, %s397_s3, [#allocation4], %s321_s22, %s321_s22, %s322_s23  }
 0x12b   :  { %318 = dma.done.wait [#allocation4], 256  }
 0x12c   :  { %319 = vsyncadd [#allocation4], 4294967040 }
 0x12d   :  { %186 = vsyncpa [#allocation3], 1 }
 0x12e   :  { %187 = vsyncpa [#allocation6], 1 }
 0x12f   :  { %188 = vsyncpa [#allocation4], 1 }

</bundles_post_ra>
